<compile_context>
chip_gen: v7x
topology: tpu7x:2x2x1
jax: 0.10.0
libtpu: 0.0.40
codegen_flags: <defaults>
</compile_context>

<pallas_src>
import jax
import jax.numpy as jnp
from jax import lax
from jax.experimental import pallas as pl
from jax.experimental.pallas import tpu as pltpu

INPUT_SIZE = 1
HIDDEN_SIZE = 32
SEQ_LEN = 8


def rnn_forward_kernel(x_ref, w_ref, out_ref, hs_ref, xw_ref):
    seq, hidden = hs_ref.shape

    # ---- Static (free) views into the packed weight slab ----
    w_ih_row  = w_ref[hidden + 0:hidden + 1, :]        # (1, hidden)  W_ih^T row
    b_row     = w_ref[hidden + 1:hidden + 2, :]        # (1, hidden)  b_ih + b_hh
    w_lin_row = w_ref[hidden + 2:hidden + 3, :]        # (1, hidden)  W_lin row
    b_lin     = w_ref[hidden + 3:hidden + 4, 0:1]      # (1, 1)       b_lin

    # ---- Time-parallel input projection (K == 1 -> VPU broadcast multiply) ----
    xw_ref[...] = x_ref[...] * w_ih_row + b_row        # (seq, hidden)

    # Recurrent weight already arrives as W_hh^T; load + cast to bf16 once,
    # hoisted out of the serial loop (single-pass MXU matmul per step).
    w_hh_bf = w_ref[0:hidden, :].astype(jnp.bfloat16)  # (hidden, hidden)

    # ---- Serial recurrence: h carried in vregs, fully unrolled ----
    def step(t, h):
        pre = xw_ref[pl.ds(t, 1), :] + jnp.dot(
            h.astype(jnp.bfloat16), w_hh_bf,
            preferred_element_type=jnp.float32)
        h_new = jnp.tanh(pre)                           # (1, hidden), EUP
        hs_ref[pl.ds(t, 1), :] = h_new                  # store off the critical path
        return h_new

    h0 = jnp.zeros((1, hidden), jnp.float32)            # matches torch.zeros(1,1,H)
    lax.fori_loop(0, seq, step, h0, unroll=True)

    # ---- Linear(hidden -> 1): broadcast multiply + lane reduction ----
    out_ref[...] = (
        jnp.sum(hs_ref[...] * w_lin_row, axis=-1, keepdims=True) + b_lin
    )


def rnn_forward(x, w_ih, w_hh, b_ih, b_hh, w_lin, b_lin):
    """x: (1, seq, input_size) float32 (batch_first, batch=1 as implied by h0)."""
    batch, seq, input_size = x.shape
    assert batch == 1, "module hardcodes h0 of batch 1"
    assert input_size == 1, "kernel's K==1 broadcast path assumes input_size == 1"
    hidden = w_hh.shape[0]

    # Host/XLA-side (free) re-orientation + packing: one weight slab, one x.
    x2d = x.reshape(seq, input_size)                          # (seq, 1)
    w_hh_t = w_hh.T                                           # (hidden, hidden) == W_hh^T
    w_ih_row = w_ih.T.reshape(1, hidden)                      # (1, hidden)
    b_fused = (b_ih + b_hh).reshape(1, hidden)                # single bias add
    w_lin_row = w_lin.reshape(1, hidden)                      # (1, hidden)
    b_lin_row = jnp.broadcast_to(b_lin.reshape(1, 1), (1, hidden))
    packed = jnp.concatenate(
        [w_hh_t, w_ih_row, b_fused, w_lin_row, b_lin_row], axis=0
    ).astype(jnp.float32)                                     # (hidden+4, hidden)

    vmem = pl.BlockSpec(memory_space=pltpu.MemorySpace.VMEM)

    out2d = pl.pallas_call(
        rnn_forward_kernel,
        out_shape=jax.ShapeDtypeStruct((seq, 1), jnp.float32),
        in_specs=[vmem, vmem],
        out_specs=vmem,
        scratch_shapes=[
            pltpu.VMEM((seq, hidden), jnp.float32),   # hidden states buffer
            pltpu.VMEM((seq, hidden), jnp.float32),   # input projection buffer
        ],
    )(x2d, packed)

    # out.view(-1, hidden) -> linear -> unsqueeze(0)  ==> (1, seq, 1)
    return out2d.reshape(1, seq, 1)


def reference_forward(x, w_ih, w_hh, b_ih, b_hh, w_lin, b_lin):
    """Pure-JAX reference mirroring nn.RNN + nn.Linear (f32 throughout)."""
    seq = x.shape[1]
    h = jnp.zeros((HIDDEN_SIZE,), jnp.float32)
    outs = []
    for t in range(seq):
        x_t = x[0, t]
        h = jnp.tanh(x_t @ w_ih.T + b_ih + h @ w_hh.T + b_hh)
        outs.append(h)
    hs = jnp.stack(outs, axis=0)                  # (seq, hidden)
    y = hs @ w_lin.T + b_lin                      # (seq, 1)
    return y.reshape(1, seq, 1)


if __name__ == "__main__":
    key = jax.random.PRNGKey(0)
    k_x, k_wih, k_whh, k_bih, k_bhh, k_wl, k_bl = jax.random.split(key, 7)

    # PyTorch-style init bound: U(-1/sqrt(hidden), 1/sqrt(hidden))
    bound = 1.0 / jnp.sqrt(jnp.float32(HIDDEN_SIZE))

    x = jax.random.normal(k_x, (1, SEQ_LEN, INPUT_SIZE), jnp.float32)
    w_ih = jax.random.uniform(k_wih, (HIDDEN_SIZE, INPUT_SIZE), jnp.float32, -bound, bound)
    w_hh = jax.random.uniform(k_whh, (HIDDEN_SIZE, HIDDEN_SIZE), jnp.float32, -bound, bound)
    b_ih = jax.random.uniform(k_bih, (HIDDEN_SIZE,), jnp.float32, -bound, bound)
    b_hh = jax.random.uniform(k_bhh, (HIDDEN_SIZE,), jnp.float32, -bound, bound)
    w_lin = jax.random.uniform(k_wl, (1, HIDDEN_SIZE), jnp.float32, -bound, bound)
    b_lin = jax.random.uniform(k_bl, (1,), jnp.float32, -bound, bound)

    out = rnn_forward(x, w_ih, w_hh, b_ih, b_hh, w_lin, b_lin)
    out = jax.block_until_ready(out)

    ref = reference_forward(x, w_ih, w_hh, b_ih, b_hh, w_lin, b_lin)
    assert out.shape == (1, SEQ_LEN, 1)
    # bf16 operands on the recurrent matmul (f32 accumulation) => looser tolerance.
    assert jnp.allclose(out, ref, rtol=2e-2, atol=2e-2), (
        f"max abs err {jnp.max(jnp.abs(out - ref))}")

    print("KERNEL_OK")
</pallas_src>

<mosaic_0001>
module attributes {stable_mosaic.version = 11 : i64} {
  func.func @rnn_forward_kernel(%arg0: memref<8x1xf32, #tpu.memory_space<vmem>>, %arg1: memref<36x32xf32, #tpu.memory_space<vmem>>, %arg2: memref<8x1xf32, #tpu.memory_space<vmem>>, %arg3: memref<8x32xf32, #tpu.memory_space<vmem>>, %arg4: memref<8x32xf32, #tpu.memory_space<vmem>>) attributes {dimension_semantics = [], scalar_prefetch = 0 : i64, scratch_operands = 2 : i64, tpu.core_type = #tpu.core_type<tc>} {
    %c32 = arith.constant 32 : index
    %c0 = arith.constant 0 : index
    %0 = vector.load %arg1[%c32, %c0] : memref<36x32xf32, #tpu.memory_space<vmem>>, vector<1x32xf32>
    %c33 = arith.constant 33 : index
    %c0_0 = arith.constant 0 : index
    %1 = vector.load %arg1[%c33, %c0_0] : memref<36x32xf32, #tpu.memory_space<vmem>>, vector<1x32xf32>
    %c34 = arith.constant 34 : index
    %c0_1 = arith.constant 0 : index
    %2 = vector.load %arg1[%c34, %c0_1] : memref<36x32xf32, #tpu.memory_space<vmem>>, vector<1x32xf32>
    %c35 = arith.constant 35 : index
    %c0_2 = arith.constant 0 : index
    %3 = vector.load %arg1[%c35, %c0_2] : memref<36x32xf32, #tpu.memory_space<vmem>>, vector<1x1xf32>
    %c0_3 = arith.constant 0 : index
    %c0_4 = arith.constant 0 : index
    %4 = vector.load %arg0[%c0_3, %c0_4] : memref<8x1xf32, #tpu.memory_space<vmem>>, vector<8x1xf32>
    %5 = vector.broadcast %4 : vector<8x1xf32> to vector<8x32xf32>
    %6 = vector.broadcast %0 : vector<1x32xf32> to vector<8x32xf32>
    %7 = arith.mulf %5, %6 : vector<8x32xf32>
    %8 = vector.broadcast %1 : vector<1x32xf32> to vector<8x32xf32>
    %9 = arith.addf %7, %8 : vector<8x32xf32>
    %c0_5 = arith.constant 0 : index
    %c0_6 = arith.constant 0 : index
    %10 = vector.load %arg4[%c0_5, %c0_6] : memref<8x32xf32, #tpu.memory_space<vmem>>, vector<8x32xf32>
    tpu.vector_store %arg4[%c0_5, %c0_6], %9 {strides = array<i32>} : memref<8x32xf32, #tpu.memory_space<vmem>>, vector<8x32xf32>,
    %c0_7 = arith.constant 0 : index
    %c0_8 = arith.constant 0 : index
    %11 = vector.load %arg1[%c0_7, %c0_8] : memref<36x32xf32, #tpu.memory_space<vmem>>, vector<32x32xf32>
    %12 = arith.truncf %11 : vector<32x32xf32> to vector<32x32xbf16>
    %cst = arith.constant 0.000000e+00 : f32
    %13 = vector.broadcast %cst : f32 to vector<1x32xf32>
    %c0_i32 = arith.constant 0 : i32
    %14 = arith.index_cast %c0_i32 : i32 to index
    %c0_9 = arith.constant 0 : index
    %15 = vector.load %arg4[%14, %c0_9] : memref<8x32xf32, #tpu.memory_space<vmem>>, vector<1x32xf32>
    %16 = arith.truncf %13 : vector<1x32xf32> to vector<1x32xbf16>
    %cst_10 = arith.constant dense<0.000000e+00> : vector<1x32xf32>
    %17 = tpu.matmul %16, %12, %cst_10 {dimension_numbers = #tpu.dot_dimension_numbers<[1], [0], [0], [1], [0, 0, 1, 1], [], []>} : vector<1x32xbf16>, vector<32x32xbf16>, vector<1x32xf32> -> vector<1x32xf32>
    %18 = arith.addf %15, %17 : vector<1x32xf32>
    %19 = math.tanh %18 : vector<1x32xf32>
    %20 = arith.index_cast %c0_i32 : i32 to index
    %c0_11 = arith.constant 0 : index
    %21 = vector.load %arg3[%20, %c0_11] : memref<8x32xf32, #tpu.memory_space<vmem>>, vector<1x32xf32>
    tpu.vector_store %arg3[%20, %c0_11], %19 {strides = array<i32>} : memref<8x32xf32, #tpu.memory_space<vmem>>, vector<1x32xf32>,
    %c1_i32 = arith.constant 1 : i32
    %22 = arith.index_cast %c1_i32 : i32 to index
    %c0_12 = arith.constant 0 : index
    %23 = vector.load %arg4[%22, %c0_12] : memref<8x32xf32, #tpu.memory_space<vmem>>, vector<1x32xf32>
    %24 = arith.truncf %19 : vector<1x32xf32> to vector<1x32xbf16>
    %cst_13 = arith.constant dense<0.000000e+00> : vector<1x32xf32>
    %25 = tpu.matmul %24, %12, %cst_13 {dimension_numbers = #tpu.dot_dimension_numbers<[1], [0], [0], [1], [0, 0, 1, 1], [], []>} : vector<1x32xbf16>, vector<32x32xbf16>, vector<1x32xf32> -> vector<1x32xf32>
    %26 = arith.addf %23, %25 : vector<1x32xf32>
    %27 = math.tanh %26 : vector<1x32xf32>
    %28 = arith.index_cast %c1_i32 : i32 to index
    %c0_14 = arith.constant 0 : index
    %29 = vector.load %arg3[%28, %c0_14] : memref<8x32xf32, #tpu.memory_space<vmem>>, vector<1x32xf32>
    tpu.vector_store %arg3[%28, %c0_14], %27 {strides = array<i32>} : memref<8x32xf32, #tpu.memory_space<vmem>>, vector<1x32xf32>,
    %c2_i32 = arith.constant 2 : i32
    %30 = arith.index_cast %c2_i32 : i32 to index
    %c0_15 = arith.constant 0 : index
    %31 = vector.load %arg4[%30, %c0_15] : memref<8x32xf32, #tpu.memory_space<vmem>>, vector<1x32xf32>
    %32 = arith.truncf %27 : vector<1x32xf32> to vector<1x32xbf16>
    %cst_16 = arith.constant dense<0.000000e+00> : vector<1x32xf32>
    %33 = tpu.matmul %32, %12, %cst_16 {dimension_numbers = #tpu.dot_dimension_numbers<[1], [0], [0], [1], [0, 0, 1, 1], [], []>} : vector<1x32xbf16>, vector<32x32xbf16>, vector<1x32xf32> -> vector<1x32xf32>
    %34 = arith.addf %31, %33 : vector<1x32xf32>
    %35 = math.tanh %34 : vector<1x32xf32>
    %36 = arith.index_cast %c2_i32 : i32 to index
    %c0_17 = arith.constant 0 : index
    %37 = vector.load %arg3[%36, %c0_17] : memref<8x32xf32, #tpu.memory_space<vmem>>, vector<1x32xf32>
    tpu.vector_store %arg3[%36, %c0_17], %35 {strides = array<i32>} : memref<8x32xf32, #tpu.memory_space<vmem>>, vector<1x32xf32>,
    %c3_i32 = arith.constant 3 : i32
    %38 = arith.index_cast %c3_i32 : i32 to index
    %c0_18 = arith.constant 0 : index
    %39 = vector.load %arg4[%38, %c0_18] : memref<8x32xf32, #tpu.memory_space<vmem>>, vector<1x32xf32>
    %40 = arith.truncf %35 : vector<1x32xf32> to vector<1x32xbf16>
    %cst_19 = arith.constant dense<0.000000e+00> : vector<1x32xf32>
    %41 = tpu.matmul %40, %12, %cst_19 {dimension_numbers = #tpu.dot_dimension_numbers<[1], [0], [0], [1], [0, 0, 1, 1], [], []>} : vector<1x32xbf16>, vector<32x32xbf16>, vector<1x32xf32> -> vector<1x32xf32>
    %42 = arith.addf %39, %41 : vector<1x32xf32>
    %43 = math.tanh %42 : vector<1x32xf32>
    %44 = arith.index_cast %c3_i32 : i32 to index
    %c0_20 = arith.constant 0 : index
    %45 = vector.load %arg3[%44, %c0_20] : memref<8x32xf32, #tpu.memory_space<vmem>>, vector<1x32xf32>
    tpu.vector_store %arg3[%44, %c0_20], %43 {strides = array<i32>} : memref<8x32xf32, #tpu.memory_space<vmem>>, vector<1x32xf32>,
    %c4_i32 = arith.constant 4 : i32
    %46 = arith.index_cast %c4_i32 : i32 to index
    %c0_21 = arith.constant 0 : index
    %47 = vector.load %arg4[%46, %c0_21] : memref<8x32xf32, #tpu.memory_space<vmem>>, vector<1x32xf32>
    %48 = arith.truncf %43 : vector<1x32xf32> to vector<1x32xbf16>
    %cst_22 = arith.constant dense<0.000000e+00> : vector<1x32xf32>
    %49 = tpu.matmul %48, %12, %cst_22 {dimension_numbers = #tpu.dot_dimension_numbers<[1], [0], [0], [1], [0, 0, 1, 1], [], []>} : vector<1x32xbf16>, vector<32x32xbf16>, vector<1x32xf32> -> vector<1x32xf32>
    %50 = arith.addf %47, %49 : vector<1x32xf32>
    %51 = math.tanh %50 : vector<1x32xf32>
    %52 = arith.index_cast %c4_i32 : i32 to index
    %c0_23 = arith.constant 0 : index
    %53 = vector.load %arg3[%52, %c0_23] : memref<8x32xf32, #tpu.memory_space<vmem>>, vector<1x32xf32>
    tpu.vector_store %arg3[%52, %c0_23], %51 {strides = array<i32>} : memref<8x32xf32, #tpu.memory_space<vmem>>, vector<1x32xf32>,
    %c5_i32 = arith.constant 5 : i32
    %54 = arith.index_cast %c5_i32 : i32 to index
    %c0_24 = arith.constant 0 : index
    %55 = vector.load %arg4[%54, %c0_24] : memref<8x32xf32, #tpu.memory_space<vmem>>, vector<1x32xf32>
    %56 = arith.truncf %51 : vector<1x32xf32> to vector<1x32xbf16>
    %cst_25 = arith.constant dense<0.000000e+00> : vector<1x32xf32>
    %57 = tpu.matmul %56, %12, %cst_25 {dimension_numbers = #tpu.dot_dimension_numbers<[1], [0], [0], [1], [0, 0, 1, 1], [], []>} : vector<1x32xbf16>, vector<32x32xbf16>, vector<1x32xf32> -> vector<1x32xf32>
    %58 = arith.addf %55, %57 : vector<1x32xf32>
    %59 = math.tanh %58 : vector<1x32xf32>
    %60 = arith.index_cast %c5_i32 : i32 to index
    %c0_26 = arith.constant 0 : index
    %61 = vector.load %arg3[%60, %c0_26] : memref<8x32xf32, #tpu.memory_space<vmem>>, vector<1x32xf32>
    tpu.vector_store %arg3[%60, %c0_26], %59 {strides = array<i32>} : memref<8x32xf32, #tpu.memory_space<vmem>>, vector<1x32xf32>,
    %c6_i32 = arith.constant 6 : i32
    %62 = arith.index_cast %c6_i32 : i32 to index
    %c0_27 = arith.constant 0 : index
    %63 = vector.load %arg4[%62, %c0_27] : memref<8x32xf32, #tpu.memory_space<vmem>>, vector<1x32xf32>
    %64 = arith.truncf %59 : vector<1x32xf32> to vector<1x32xbf16>
    %cst_28 = arith.constant dense<0.000000e+00> : vector<1x32xf32>
    %65 = tpu.matmul %64, %12, %cst_28 {dimension_numbers = #tpu.dot_dimension_numbers<[1], [0], [0], [1], [0, 0, 1, 1], [], []>} : vector<1x32xbf16>, vector<32x32xbf16>, vector<1x32xf32> -> vector<1x32xf32>
    %66 = arith.addf %63, %65 : vector<1x32xf32>
    %67 = math.tanh %66 : vector<1x32xf32>
    %68 = arith.index_cast %c6_i32 : i32 to index
    %c0_29 = arith.constant 0 : index
    %69 = vector.load %arg3[%68, %c0_29] : memref<8x32xf32, #tpu.memory_space<vmem>>, vector<1x32xf32>
    tpu.vector_store %arg3[%68, %c0_29], %67 {strides = array<i32>} : memref<8x32xf32, #tpu.memory_space<vmem>>, vector<1x32xf32>,
    %c7_i32 = arith.constant 7 : i32
    %70 = arith.index_cast %c7_i32 : i32 to index
    %c0_30 = arith.constant 0 : index
    %71 = vector.load %arg4[%70, %c0_30] : memref<8x32xf32, #tpu.memory_space<vmem>>, vector<1x32xf32>
    %72 = arith.truncf %67 : vector<1x32xf32> to vector<1x32xbf16>
    %cst_31 = arith.constant dense<0.000000e+00> : vector<1x32xf32>
    %73 = tpu.matmul %72, %12, %cst_31 {dimension_numbers = #tpu.dot_dimension_numbers<[1], [0], [0], [1], [0, 0, 1, 1], [], []>} : vector<1x32xbf16>, vector<32x32xbf16>, vector<1x32xf32> -> vector<1x32xf32>
    %74 = arith.addf %71, %73 : vector<1x32xf32>
    %75 = math.tanh %74 : vector<1x32xf32>
    %76 = arith.index_cast %c7_i32 : i32 to index
    %c0_32 = arith.constant 0 : index
    %77 = vector.load %arg3[%76, %c0_32] : memref<8x32xf32, #tpu.memory_space<vmem>>, vector<1x32xf32>
    tpu.vector_store %arg3[%76, %c0_32], %75 {strides = array<i32>} : memref<8x32xf32, #tpu.memory_space<vmem>>, vector<1x32xf32>,
    %c8_i32 = arith.constant 8 : i32
    %c0_33 = arith.constant 0 : index
    %c0_34 = arith.constant 0 : index
    %78 = vector.load %arg3[%c0_33, %c0_34] : memref<8x32xf32, #tpu.memory_space<vmem>>, vector<8x32xf32>
    %79 = vector.broadcast %2 : vector<1x32xf32> to vector<8x32xf32>
    %80 = arith.mulf %78, %79 : vector<8x32xf32>
    %cst_35 = arith.constant dense<0.000000e+00> : vector<8xf32>
    %81 = vector.multi_reduction <add>, %80, %cst_35 [1] : vector<8x32xf32> to vector<8xf32>
    %82 = vector.shape_cast %81 : vector<8xf32> to vector<8x1xf32>
    %83 = vector.broadcast %3 : vector<1x1xf32> to vector<8x1xf32>
    %84 = arith.addf %82, %83 : vector<8x1xf32>
    %c0_36 = arith.constant 0 : index
    %c0_37 = arith.constant 0 : index
    %85 = vector.load %arg2[%c0_36, %c0_37] : memref<8x1xf32, #tpu.memory_space<vmem>>, vector<8x1xf32>
    tpu.vector_store %arg2[%c0_36, %c0_37], %84 {strides = array<i32>} : memref<8x1xf32, #tpu.memory_space<vmem>>, vector<8x1xf32>,
    return
  }
}

</mosaic_0001>

<bundles_post_ra>
// kernel: tpu_custom_call.1
= control target key start
LH: loop header
LB: loop body
LE: loop exit
PB: predicated region body
PF: predicated region fallthrough
CT: control target
= control target key end

     0   :  { %v563_v0 = vmov 0.0   ;;  %vm564_vm0 = vmmov 0   ;;  %v565_v6 = vmov 0   ;;  %vm32_vm1 = vcmask 261120   ;;  %s680_s1 = inlined_call_operand.vmem [shape: f32[36,32], index: 1, kind: input, shape index: {}]   ;;  %s681_s0 = inlined_call_operand.vmem [shape: f32[8,1], index: 0, kind: input, shape index: {}]   ;;  %s682_s2 = inlined_call_operand.vmem [shape: f32[8,1], index: 2, kind: output, shape index: {}]  }
   0x1   :  { %479 = vmatprep.subr.bf16.mxu0 %v563_v0  ;;  %v34_v1 = vld [vmem:[%s680_s1] sm:$0xff]  ;;  %v35_v2 = vld [vmem:[%s680_s1 + $0x8] sm:$0xff]  ;;  %v36_v3 = vld [vmem:[%s680_s1 + $0x10] sm:$0xff]  ;;  %483 = vmatprep.mubr.msk.bf16.mxu0 %vm564_vm0, %v563_v0  ;;  %vm86_vm2 = vcmask 253952   ;;  %vm438_vm3 = vcmask 7168  }
   0x2   :  { %v593_v4 = vpack.c.bf16 %v35_v2, %v34_v1  ;;  %v37_v5 = vld [vmem:[%s680_s1 + $0x18] sm:$0xff]  ;;  %546 = vset.pattern.permute.xlu0 %v565_v6  ;;  %v16_v7 = vld [vmem:[%s681_s0] sm:$0xff]  ;;  %487 = vmatprep.subr.bf16.mxu1 %v563_v0 }
   0x3   :  { %19 = vperm.xlu0 %546, %v16_v7   ;;  %491 = vmatprep.mubr.msk.bf16.mxu1 %vm564_vm0, %v563_v0  ;;  %v605_v8 = vpack.c.bf16 %v37_v5, %v36_v3  ;;  %v444_v9 = vld [vmem:[%s680_s1 + $0x20] ss:$0 sm:$0xff]  ;;  %v445_v10 = vld [vmem:[%s680_s1 + $0x21] ss:$0 sm:$0xff] }
   0x4   :  { %480 = vmatpush3.bf16.msra.mxu0 %v593_v4  ;;  %488 = vmatpush3.bf16.msra.mxu1 %v593_v4 }
   0x5   :  { %481 = vmatprep.subr.bf16.mxu0 %v563_v0  ;;  %489 = vmatprep.subr.bf16.mxu1 %v563_v0 }
   0x8   :  { %482 = vmatpush3.bf16.msra.mxu0 %v605_v8  ;;  %490 = vmatpush3.bf16.msra.mxu1 %v605_v8 }
   0x9   :  { %495 = vmatprep.subr.bf16.mxu0 %v563_v0  ;;  %503 = vmatprep.subr.bf16.mxu1 %v563_v0 }
   0xb   :  { %484 = vmatmul.mubr.bf16.vlgmr.msra.gmra.mrb[0].mxu0 %v565_v6 }
   0xc   :  { %496 = vmatpush3.bf16.msra.mxu0 %v593_v4  ;;  %499 = vmatprep.mubr.msk.bf16.mxu0 %vm564_vm0, %v563_v0 }
   0xd   :  { %497 = vmatprep.subr.bf16.mxu0 %v563_v0 }
  0x10   :  { %498 = vmatpush3.bf16.msra.mxu0 %v605_v8 }
  0x11   :  { %511 = vmatprep.subr.bf16.mxu0 %v563_v0 }
  0x82   :  { %v20_v11 = vpop.permute.xlu0 %19 }
  0x83   :  { %v26_v12 = vmul.f32 %v444_v9, %v20_v11 }
  0x85   :  { %v31_v13 = vadd.f32 %v445_v10, %v26_v12 }
  0x87   :  { %33 = vst.msk [vmem:[#allocation3] sm:$0xff] %vm32_vm1, %v31_v13  ;;  %v453_v13 = vld [vmem:[%s680_s1 + $0x22] ss:$0 sm:$0xff] }
  0x8e   :  { %v40_v14 = vld [vmem:[#allocation3] sm:$0x1]  ;;  %v88_v22 = vld [vmem:[#allocation3 + $0x1] sm:$0x1]  ;;  %v136_v30 = vld [vmem:[#allocation3 + $0x2] sm:$0x1] }
  0x8f   :  { %v184_v38 = vld [vmem:[#allocation3 + $0x3] sm:$0x1]  ;;  %v232_v46 = vld [vmem:[#allocation3 + $0x4] sm:$0x1]  ;;  %v280_v54 = vld [vmem:[#allocation3 + $0x5] sm:$0x1] }
  0x90   :  { %v328_v62 = vld [vmem:[#allocation3 + $0x6] sm:$0x1]  ;;  %v376_v6 = vld [vmem:[#allocation3 + $0x7] sm:$0x1] }
  0xde   :  { %v78_v15 = vpop.f32.mrb[0].mxu0 }
  0xdf   :  { %v84_v16 = vadd.f32 %v78_v15, %v40_v14  ;;  %v485_v17 = vpop.f32.mrb[1].mxu0 }
  0xe0   :  { %v81_v18 = vpop.f32.mrb[2].mxu0  ;;  %v454_v17 = vld [vmem:[%s680_s1 + $0x23] ss:$0 sm:$0xff] }
  0xe1   :  { %547 = vtanh.f32 %v84_v16  ;;  %v486_v19 = vpop.f32.mrb[3].mxu0 }
  0xeb   :  { %v548_v20 = vpop.eup %547 }
  0xec   :  { %87 = vst.msk [vmem:[#allocation2] sm:$0x1] %vm86_vm2, %v548_v20  ;;  %v89_v21 = vpack.c.bf16 %v548_v20, %v548_v20 }
  0xee   :  { %492 = vmatmul.mubr.msk.bf16.vlgmr.msra.gmra.mrb[0].mxu1 %vm32_vm1, %v89_v21 }
  0xef   :  { %504 = vmatpush3.bf16.msra.mxu1 %v593_v4  ;;  %507 = vmatprep.mubr.msk.bf16.mxu1 %vm564_vm0, %v563_v0 }
  0xf0   :  { %505 = vmatprep.subr.bf16.mxu1 %v563_v0 }
  0xf3   :  { %506 = vmatpush3.bf16.msra.mxu1 %v605_v8 }
  0xf4   :  { %519 = vmatprep.subr.bf16.mxu1 %v563_v0 }
 0x1c1   :  { %v127_v23 = vpop.f32.mrb[0].mxu1 }
 0x1c2   :  { %v133_v24 = vadd.f32 %v127_v23, %v88_v22  ;;  %v493_v25 = vpop.f32.mrb[1].mxu1 }
 0x1c3   :  { %v130_v26 = vpop.f32.mrb[2].mxu1 }
 0x1c4   :  { %549 = vtanh.f32 %v133_v24  ;;  %v494_v27 = vpop.f32.mrb[3].mxu1 }
 0x1ce   :  { %v550_v28 = vpop.eup %549 }
 0x1cf   :  { %135 = vst.msk [vmem:[#allocation2 + $0x1] sm:$0x1] %vm86_vm2, %v550_v28  ;;  %v137_v29 = vpack.c.bf16 %v550_v28, %v550_v28 }
 0x1d1   :  { %500 = vmatmul.mubr.msk.bf16.vlgmr.msra.gmra.mrb[4].mxu0 %vm32_vm1, %v137_v29 }
 0x1d2   :  { %512 = vmatpush3.bf16.msra.mxu0 %v593_v4  ;;  %515 = vmatprep.mubr.msk.bf16.mxu0 %vm564_vm0, %v563_v0 }
 0x1d3   :  { %513 = vmatprep.subr.bf16.mxu0 %v563_v0 }
 0x1d6   :  { %514 = vmatpush3.bf16.msra.mxu0 %v605_v8 }
 0x1d7   :  { %527 = vmatprep.subr.bf16.mxu0 %v563_v0 }
 0x2a4   :  { %v175_v31 = vpop.f32.mrb[4].mxu0 }
 0x2a5   :  { %v181_v32 = vadd.f32 %v175_v31, %v136_v30  ;;  %v501_v33 = vpop.f32.mrb[5].mxu0 }
 0x2a6   :  { %v178_v34 = vpop.f32.mrb[6].mxu0 }
 0x2a7   :  { %551 = vtanh.f32 %v181_v32  ;;  %v502_v35 = vpop.f32.mrb[7].mxu0 }
 0x2b1   :  { %v552_v36 = vpop.eup %551 }
 0x2b2   :  { %183 = vst.msk [vmem:[#allocation2 + $0x2] sm:$0x1] %vm86_vm2, %v552_v36  ;;  %v185_v37 = vpack.c.bf16 %v552_v36, %v552_v36 }
 0x2b4   :  { %508 = vmatmul.mubr.msk.bf16.vlgmr.msra.gmra.mrb[4].mxu1 %vm32_vm1, %v185_v37 }
 0x2b5   :  { %520 = vmatpush3.bf16.msra.mxu1 %v593_v4  ;;  %523 = vmatprep.mubr.msk.bf16.mxu1 %vm564_vm0, %v563_v0 }
 0x2b6   :  { %521 = vmatprep.subr.bf16.mxu1 %v563_v0 }
 0x2b9   :  { %522 = vmatpush3.bf16.msra.mxu1 %v605_v8 }
 0x2ba   :  { %535 = vmatprep.subr.bf16.mxu1 %v563_v0 }
 0x387   :  { %v223_v39 = vpop.f32.mrb[4].mxu1 }
 0x388   :  { %v229_v40 = vadd.f32 %v223_v39, %v184_v38  ;;  %v509_v41 = vpop.f32.mrb[5].mxu1 }
 0x389   :  { %v226_v42 = vpop.f32.mrb[6].mxu1 }
 0x38a   :  { %553 = vtanh.f32 %v229_v40  ;;  %v510_v43 = vpop.f32.mrb[7].mxu1 }
 0x394   :  { %v554_v44 = vpop.eup %553 }
 0x395   :  { %231 = vst.msk [vmem:[#allocation2 + $0x3] sm:$0x1] %vm86_vm2, %v554_v44  ;;  %v233_v45 = vpack.c.bf16 %v554_v44, %v554_v44 }
 0x397   :  { %516 = vmatmul.mubr.msk.bf16.vlgmr.msra.gmra.mrb[8].mxu0 %vm32_vm1, %v233_v45 }
 0x398   :  { %528 = vmatpush3.bf16.msra.mxu0 %v593_v4  ;;  %531 = vmatprep.mubr.msk.bf16.mxu0 %vm564_vm0, %v563_v0 }
 0x399   :  { %529 = vmatprep.subr.bf16.mxu0 %v563_v0 }
 0x39c   :  { %530 = vmatpush3.bf16.msra.mxu0 %v605_v8 }
 0x46a   :  { %v271_v47 = vpop.f32.mrb[8].mxu0 }
 0x46b   :  { %v277_v48 = vadd.f32 %v271_v47, %v232_v46  ;;  %v517_v49 = vpop.f32.mrb[9].mxu0 }
 0x46c   :  { %v274_v50 = vpop.f32.mrb[10].mxu0 }
 0x46d   :  { %555 = vtanh.f32 %v277_v48  ;;  %v518_v51 = vpop.f32.mrb[11].mxu0 }
 0x477   :  { %v556_v52 = vpop.eup %555 }
 0x478   :  { %279 = vst.msk [vmem:[#allocation2 + $0x4] sm:$0x1] %vm86_vm2, %v556_v52  ;;  %v281_v53 = vpack.c.bf16 %v556_v52, %v556_v52 }
 0x47a   :  { %524 = vmatmul.mubr.msk.bf16.vlgmr.msra.gmra.mrb[8].mxu1 %vm32_vm1, %v281_v53 }
 0x47b   :  { %536 = vmatpush3.bf16.msra.mxu1 %v593_v4  ;;  %539 = vmatprep.mubr.msk.bf16.mxu1 %vm564_vm0, %v563_v0 }
 0x47c   :  { %537 = vmatprep.subr.bf16.mxu1 %v563_v0 }
 0x47f   :  { %538 = vmatpush3.bf16.msra.mxu1 %v605_v8 }
 0x54d   :  { %v319_v55 = vpop.f32.mrb[8].mxu1 }
 0x54e   :  { %v325_v56 = vadd.f32 %v319_v55, %v280_v54  ;;  %v525_v57 = vpop.f32.mrb[9].mxu1 }
 0x54f   :  { %v322_v58 = vpop.f32.mrb[10].mxu1 }
 0x550   :  { %557 = vtanh.f32 %v325_v56  ;;  %v526_v59 = vpop.f32.mrb[11].mxu1 }
 0x55a   :  { %v558_v60 = vpop.eup %557 }
 0x55b   :  { %327 = vst.msk [vmem:[#allocation2 + $0x5] sm:$0x1] %vm86_vm2, %v558_v60  ;;  %v329_v61 = vpack.c.bf16 %v558_v60, %v558_v60 }
 0x55d   :  { %532 = vmatmul.mubr.msk.bf16.vlgmr.msra.gmra.mrb[12].mxu0 %vm32_vm1, %v329_v61 }
 0x630   :  { %v367_v63 = vpop.f32.mrb[12].mxu0 }
 0x631   :  { %v373_v1 = vadd.f32 %v367_v63, %v328_v62  ;;  %v533_v2 = vpop.f32.mrb[13].mxu0 }
 0x632   :  { %v370_v0 = vpop.f32.mrb[14].mxu0 }
 0x633   :  { %559 = vtanh.f32 %v373_v1  ;;  %v534_v3 = vpop.f32.mrb[15].mxu0 }
 0x63d   :  { %v560_v4 = vpop.eup %559 }
 0x63e   :  { %375 = vst.msk [vmem:[#allocation2 + $0x6] sm:$0x1] %vm86_vm2, %v560_v4  ;;  %v377_v5 = vpack.c.bf16 %v560_v4, %v560_v4 }
 0x640   :  { %540 = vmatmul.mubr.msk.bf16.vlgmr.msra.gmra.mrb[12].mxu1 %vm32_vm1, %v377_v5 }
 0x713   :  { %v415_v7 = vpop.f32.mrb[12].mxu1 }
 0x714   :  { %v421_v8 = vadd.f32 %v415_v7, %v376_v6  ;;  %v541_v9 = vpop.f32.mrb[13].mxu1 }
 0x715   :  { %v418_v10 = vpop.f32.mrb[14].mxu1 }
 0x716   :  { %561 = vtanh.f32 %v421_v8  ;;  %v542_v11 = vpop.f32.mrb[15].mxu1 }
 0x720   :  { %v562_v12 = vpop.eup %561 }
 0x721   :  { %423 = vst.msk [vmem:[#allocation2 + $0x7] sm:$0x1] %vm86_vm2, %v562_v12 }
 0x728   :  { %v424_v14 = vld [vmem:[#allocation2] sm:$0xff] }
 0x729   :  { %v429_v15 = vmul.f32 %v453_v13, %v424_v14 }
 0x72b   :  { %v430_v16 = vsel %vm32_vm1, %v429_v15, 0.0 }
 0x72c   :  { %431 = vadd.xlane.f32.xlu0 %v430_v16 }
 0x7b9   :  { %v432_v18 = vpop.xlane.xlu0 %431 }
 0x7ba   :  { %v437_v19 = vadd.f32 %v454_v17, %v432_v18 }
 0x7bc   :  { %439 = vst.msk [vmem:[%s682_s2] sm:$0xff] %vm438_vm3, %v437_v19 }

</bundles_post_ra>
